<compile_context>
chip_gen: v7x
topology: tpu7x:2x2x1
jax: 0.10.0
libtpu: 0.0.40
codegen_flags: <defaults>
</compile_context>

<pallas_src>
import functools
import math

import jax
import jax.numpy as jnp
from jax.experimental import pallas as pl
from jax.experimental.pallas import tpu as pltpu


def _make_mlp_kernel(num_linear):
    """Kernel for the transposed problem.

    Activations are (features, batch_tile); weights are PyTorch-native
    (out, in); biases are (out, 1) and broadcast over the lane (batch) axis.
    Computes W @ H + b per layer, with tanh after every layer except the last
    (matching the nn.Sequential in the spec).
    """

    def kernel(x_ref, *rest):
        param_refs = rest[:-1]              # interleaved (w0, b0, w1, b1, ...)
        out_ref = rest[-1]
        h = x_ref[...]                      # (D_in, block_b), f32
        for i in range(num_linear):
            w = param_refs[2 * i][...]      # (out_i, in_i)
            b = param_refs[2 * i + 1][...]  # (out_i, 1) -> broadcast over lanes
            h = jnp.dot(w, h, preferred_element_type=jnp.float32) + b
            if i < num_linear - 1:          # final Linear has no Tanh
                h = jnp.tanh(h)
        out_ref[...] = h.astype(out_ref.dtype)

    return kernel


@functools.partial(jax.jit, static_argnames=("block_b", "single_buffer_params"))
def _mlp_forward_impl(x, params, *, block_b, single_buffer_params):
    num_linear = len(params) // 2
    B, D_in = x.shape
    weights = params[::2]
    out_dim = weights[-1].shape[0]

    # Pad batch to a multiple of block_b (block_b is a multiple of 128 so all
    # lane tiles are full / unmasked).  Padded columns are sliced off below.
    B_pad = ((B + block_b - 1) // block_b) * block_b
    xt = x.T.astype(jnp.float32)                       # (D_in, B) lane-dense
    if B_pad != B:
        xt = jnp.pad(xt, ((0, 0), (0, B_pad - B)))

    grid = (B_pad // block_b,)

    in_specs = [pl.BlockSpec((D_in, block_b), lambda i: (0, i))]
    param_kw = {}
    if single_buffer_params:
        # Weights/biases never change across grid steps -> no double buffer.
        param_kw = dict(pipeline_mode=pl.Buffered(1))
    for p in params:
        in_specs.append(pl.BlockSpec(p.shape, lambda i: (0, 0), **param_kw))

    out_spec = pl.BlockSpec((out_dim, block_b), lambda i: (0, i))

    # Explicit VMEM budget with headroom (keeps big tiles portable to v7x).
    param_bytes = sum(int(p.size) * p.dtype.itemsize for p in params)
    buf = 1 if single_buffer_params else 2
    max_feat = max([D_in, out_dim] + [int(w.shape[0]) for w in weights])
    vmem_est = (2 * D_in * block_b * 4            # double-buffered x tile
                + 2 * out_dim * block_b * 4       # double-buffered out tile
                + buf * param_bytes               # parameters
                + 2 * max_feat * block_b * 4)     # live intermediates
    vmem_limit = int(min(max(4 * vmem_est + (4 << 20), 16 << 20), 32 << 20))

    flops = 2 * B_pad * sum(int(w.shape[0]) * int(w.shape[1]) for w in weights)
    transcendentals = B_pad * sum(int(w.shape[0]) for w in weights[:-1])
    bytes_accessed = int(xt.size) * 4 + B_pad * out_dim * 4 + param_bytes

    out_t = pl.pallas_call(
        _make_mlp_kernel(num_linear),
        out_shape=jax.ShapeDtypeStruct((out_dim, B_pad), x.dtype),
        grid=grid,
        in_specs=in_specs,
        out_specs=out_spec,
        compiler_params=pltpu.CompilerParams(
            dimension_semantics=("parallel",),
            vmem_limit_bytes=vmem_limit,
        ),
        cost_estimate=pl.CostEstimate(
            flops=flops,
            transcendentals=transcendentals,
            bytes_accessed=bytes_accessed,
        ),
    )(xt, *params)

    return out_t[:, :B].T                              # back to (B, out_dim)


def mlp_forward(x, params, *, block_b=512):
    """Runs the fused MLP kernel.

    Args:
      x: (B, D_in) input (any B; padded internally).
      params: flat tuple (w0, b0, ..., wL, bL); wi of shape (out_i, in_i)
        (PyTorch nn.Linear layout), bi of shape (out_i, 1).
      block_b: requested batch tile (rounded to a multiple of 128).
    Returns:
      (B, 1) output in x.dtype.
    """
    B = x.shape[0]
    # Lane-width-aligned tile; keep >=2 grid steps when the batch allows it so
    # v7x's two TensorCores both get work (irrelevant on 1-TC v5e/v6e, where
    # the two resulting steps cost ~0.7us of pipeline overhead — negligible).
    bb = max(128, (min(int(block_b), 1024) // 128) * 128)
    if B >= 256:
        bb = min(bb, max(128, ((B // 2) // 128) * 128))
    try:
        out = _mlp_forward_impl(x, params, block_b=bb,
                                single_buffer_params=True)
        return jax.block_until_ready(out)
    except Exception:
        # Fallback if single-buffered (pl.Buffered(1)) specs are rejected by
        # the installed Pallas version; semantics are identical.
        out = _mlp_forward_impl(x, params, block_b=bb,
                                single_buffer_params=False)
        return jax.block_until_ready(out)


def init_mlp_params(key, layer_sizes):
    """PyTorch-layout init: wi (out, in), bi (out, 1), U(-1/sqrt(fan_in), ...)."""
    dims = list(zip(layer_sizes[:-1], layer_sizes[1:])) + [(layer_sizes[-1], 1)]
    params = []
    for (fan_in, fan_out) in dims:
        key, kw, kb = jax.random.split(key, 3)
        bound = 1.0 / math.sqrt(float(fan_in))
        w = jax.random.uniform(kw, (fan_out, fan_in), jnp.float32,
                               minval=-bound, maxval=bound)
        b = jax.random.uniform(kb, (fan_out, 1), jnp.float32,
                               minval=-bound, maxval=bound)
        params.extend([w, b])
    return tuple(params)


def mlp_reference(x, params):
    """Pure-JAX reference matching the PyTorch forward exactly."""
    num_linear = len(params) // 2
    h = x.astype(jnp.float32)
    for i in range(num_linear):
        w = params[2 * i]                 # (out, in)
        b = params[2 * i + 1]             # (out, 1)
        h = h @ w.T + b[:, 0]
        if i < num_linear - 1:
            h = jnp.tanh(h)
    return h


if __name__ == "__main__":
    key = jax.random.PRNGKey(0)
    layer_sizes = [16, 32, 32]   # Linear(16,32)+Tanh, Linear(32,32)+Tanh, Linear(32,1)
    batch = 256                  # -> 2 grid steps of 128 lanes each

    key, kx = jax.random.split(key)
    x = jax.random.normal(kx, (batch, layer_sizes[0]), jnp.float32)
    params = init_mlp_params(key, layer_sizes)

    out = mlp_forward(x, params)
    out = jax.block_until_ready(out)

    ref = mlp_reference(x, params)
    assert out.shape == (batch, 1), out.shape
    assert jnp.allclose(out, ref, atol=1e-4, rtol=1e-4), (
        float(jnp.max(jnp.abs(out - ref))))

    print("KERNEL_OK")
</pallas_src>

<mosaic_0001>
module attributes {stable_mosaic.version = 11 : i64} {
  func.func @kernel(%arg0: i32, %arg1: memref<16x128xf32, #tpu.memory_space<vmem>>, %arg2: memref<32x16xf32, #tpu.memory_space<vmem>>, %arg3: memref<32x1xf32, #tpu.memory_space<vmem>>, %arg4: memref<32x32xf32, #tpu.memory_space<vmem>>, %arg5: memref<32x1xf32, #tpu.memory_space<vmem>>, %arg6: memref<1x32xf32, #tpu.memory_space<vmem>>, %arg7: memref<1x1xf32, #tpu.memory_space<vmem>>, %arg8: memref<1x128xf32, #tpu.memory_space<vmem>>) attributes {dimension_semantics = [#tpu.dimension_semantics<parallel>], iteration_bounds = array<i64: 2>, scalar_prefetch = 0 : i64, scratch_operands = 0 : i64, tpu.core_type = #tpu.core_type<tc>, window_params = [{transform_indices = @transform_0, window_bounds = array<i64: 16, 128>}, {pipeline_mode = #tpu.pipeline_mode<synchronous>, transform_indices = @transform_1, window_bounds = array<i64: 32, 16>}, {pipeline_mode = #tpu.pipeline_mode<synchronous>, transform_indices = @transform_2, window_bounds = array<i64: 32, 1>}, {pipeline_mode = #tpu.pipeline_mode<synchronous>, transform_indices = @transform_3, window_bounds = array<i64: 32, 32>}, {pipeline_mode = #tpu.pipeline_mode<synchronous>, transform_indices = @transform_4, window_bounds = array<i64: 32, 1>}, {pipeline_mode = #tpu.pipeline_mode<synchronous>, transform_indices = @transform_5, window_bounds = array<i64: 1, 32>}, {pipeline_mode = #tpu.pipeline_mode<synchronous>, transform_indices = @transform_6, window_bounds = array<i64: 1, 1>}, {transform_indices = @transform_7, window_bounds = array<i64: 1, 128>}]} {
    %c0 = arith.constant 0 : index
    %c0_0 = arith.constant 0 : index
    %0 = vector.load %arg1[%c0, %c0_0] : memref<16x128xf32, #tpu.memory_space<vmem>>, vector<16x128xf32>
    %c0_1 = arith.constant 0 : index
    %c0_2 = arith.constant 0 : index
    %1 = vector.load %arg2[%c0_1, %c0_2] : memref<32x16xf32, #tpu.memory_space<vmem>>, vector<32x16xf32>
    %c0_3 = arith.constant 0 : index
    %c0_4 = arith.constant 0 : index
    %2 = vector.load %arg3[%c0_3, %c0_4] : memref<32x1xf32, #tpu.memory_space<vmem>>, vector<32x1xf32>
    %cst = arith.constant dense<0.000000e+00> : vector<32x128xf32>
    %3 = tpu.matmul %1, %0, %cst {dimension_numbers = #tpu.dot_dimension_numbers<[1], [0], [0], [1], [0, 0, 1, 1], [], []>} : vector<32x16xf32>, vector<16x128xf32>, vector<32x128xf32> -> vector<32x128xf32>
    %4 = vector.broadcast %2 : vector<32x1xf32> to vector<32x128xf32>
    %5 = arith.addf %3, %4 : vector<32x128xf32>
    %6 = math.tanh %5 : vector<32x128xf32>
    %c0_5 = arith.constant 0 : index
    %c0_6 = arith.constant 0 : index
    %7 = vector.load %arg4[%c0_5, %c0_6] : memref<32x32xf32, #tpu.memory_space<vmem>>, vector<32x32xf32>
    %c0_7 = arith.constant 0 : index
    %c0_8 = arith.constant 0 : index
    %8 = vector.load %arg5[%c0_7, %c0_8] : memref<32x1xf32, #tpu.memory_space<vmem>>, vector<32x1xf32>
    %cst_9 = arith.constant dense<0.000000e+00> : vector<32x128xf32>
    %9 = tpu.matmul %7, %6, %cst_9 {dimension_numbers = #tpu.dot_dimension_numbers<[1], [0], [0], [1], [0, 0, 1, 1], [], []>} : vector<32x32xf32>, vector<32x128xf32>, vector<32x128xf32> -> vector<32x128xf32>
    %10 = vector.broadcast %8 : vector<32x1xf32> to vector<32x128xf32>
    %11 = arith.addf %9, %10 : vector<32x128xf32>
    %12 = math.tanh %11 : vector<32x128xf32>
    %c0_10 = arith.constant 0 : index
    %c0_11 = arith.constant 0 : index
    %13 = vector.load %arg6[%c0_10, %c0_11] : memref<1x32xf32, #tpu.memory_space<vmem>>, vector<1x32xf32>
    %c0_12 = arith.constant 0 : index
    %c0_13 = arith.constant 0 : index
    %14 = vector.load %arg7[%c0_12, %c0_13] : memref<1x1xf32, #tpu.memory_space<vmem>>, vector<1x1xf32>
    %cst_14 = arith.constant dense<0.000000e+00> : vector<1x128xf32>
    %15 = tpu.matmul %13, %12, %cst_14 {dimension_numbers = #tpu.dot_dimension_numbers<[1], [0], [0], [1], [0, 0, 1, 1], [], []>} : vector<1x32xf32>, vector<32x128xf32>, vector<1x128xf32> -> vector<1x128xf32>
    %16 = vector.broadcast %14 : vector<1x1xf32> to vector<1x128xf32>
    %17 = arith.addf %15, %16 : vector<1x128xf32>
    %c0_15 = arith.constant 0 : index
    %c0_16 = arith.constant 0 : index
    %18 = vector.load %arg8[%c0_15, %c0_16] : memref<1x128xf32, #tpu.memory_space<vmem>>, vector<1x128xf32>
    tpu.vector_store %arg8[%c0_15, %c0_16], %17 {strides = array<i32>} : memref<1x128xf32, #tpu.memory_space<vmem>>, vector<1x128xf32>,
    return
  }
  func.func @transform_0(%arg0: i32) -> (i32, i32) {
    %c0_i32 = arith.constant 0 : i32
    %c0_i32_0 = arith.constant 0 : i32
    return %c0_i32, %arg0 : i32, i32
  }
  func.func @transform_1(%arg0: i32) -> (i32, i32) {
    %c0_i32 = arith.constant 0 : i32
    %c0_i32_0 = arith.constant 0 : i32
    %c0_i32_1 = arith.constant 0 : i32
    return %c0_i32, %c0_i32_0 : i32, i32
  }
  func.func @transform_2(%arg0: i32) -> (i32, i32) {
    %c0_i32 = arith.constant 0 : i32
    %c0_i32_0 = arith.constant 0 : i32
    %c0_i32_1 = arith.constant 0 : i32
    return %c0_i32, %c0_i32_0 : i32, i32
  }
  func.func @transform_3(%arg0: i32) -> (i32, i32) {
    %c0_i32 = arith.constant 0 : i32
    %c0_i32_0 = arith.constant 0 : i32
    %c0_i32_1 = arith.constant 0 : i32
    return %c0_i32, %c0_i32_0 : i32, i32
  }
  func.func @transform_4(%arg0: i32) -> (i32, i32) {
    %c0_i32 = arith.constant 0 : i32
    %c0_i32_0 = arith.constant 0 : i32
    %c0_i32_1 = arith.constant 0 : i32
    return %c0_i32, %c0_i32_0 : i32, i32
  }
  func.func @transform_5(%arg0: i32) -> (i32, i32) {
    %c0_i32 = arith.constant 0 : i32
    %c0_i32_0 = arith.constant 0 : i32
    %c0_i32_1 = arith.constant 0 : i32
    return %c0_i32, %c0_i32_0 : i32, i32
  }
  func.func @transform_6(%arg0: i32) -> (i32, i32) {
    %c0_i32 = arith.constant 0 : i32
    %c0_i32_0 = arith.constant 0 : i32
    %c0_i32_1 = arith.constant 0 : i32
    return %c0_i32, %c0_i32_0 : i32, i32
  }
  func.func @transform_7(%arg0: i32) -> (i32, i32) {
    %c0_i32 = arith.constant 0 : i32
    %c0_i32_0 = arith.constant 0 : i32
    return %c0_i32, %arg0 : i32, i32
  }
}

module attributes {stable_mosaic.version = 11 : i64} {
  func.func @kernel(%arg0: i32, %arg1: memref<16x128xf32, #tpu.memory_space<vmem>>, %arg2: memref<32x16xf32, #tpu.memory_space<vmem>>, %arg3: memref<32x1xf32, #tpu.memory_space<vmem>>, %arg4: memref<32x32xf32, #tpu.memory_space<vmem>>, %arg5: memref<32x1xf32, #tpu.memory_space<vmem>>, %arg6: memref<1x32xf32, #tpu.memory_space<vmem>>, %arg7: memref<1x1xf32, #tpu.memory_space<vmem>>, %arg8: memref<1x128xf32, #tpu.memory_space<vmem>>) attributes {dimension_semantics = [#tpu.dimension_semantics<parallel>], iteration_bounds = array<i64: 2>, scalar_prefetch = 0 : i64, scratch_operands = 0 : i64, tpu.core_type = #tpu.core_type<tc>, window_params = [{transform_indices = @transform_0, window_bounds = array<i64: 16, 128>}, {pipeline_mode = #tpu.pipeline_mode<synchronous>, transform_indices = @transform_1, window_bounds = array<i64: 32, 16>}, {pipeline_mode = #tpu.pipeline_mode<synchronous>, transform_indices = @transform_2, window_bounds = array<i64: 32, 1>}, {pipeline_mode = #tpu.pipeline_mode<synchronous>, transform_indices = @transform_3, window_bounds = array<i64: 32, 32>}, {pipeline_mode = #tpu.pipeline_mode<synchronous>, transform_indices = @transform_4, window_bounds = array<i64: 32, 1>}, {pipeline_mode = #tpu.pipeline_mode<synchronous>, transform_indices = @transform_5, window_bounds = array<i64: 1, 32>}, {pipeline_mode = #tpu.pipeline_mode<synchronous>, transform_indices = @transform_6, window_bounds = array<i64: 1, 1>}, {transform_indices = @transform_7, window_bounds = array<i64: 1, 128>}]} {
    %c0 = arith.constant 0 : index
    %c0_0 = arith.constant 0 : index
    %0 = vector.load %arg1[%c0, %c0_0] : memref<16x128xf32, #tpu.memory_space<vmem>>, vector<16x128xf32>
    %c0_1 = arith.constant 0 : index
    %c0_2 = arith.constant 0 : index
    %1 = vector.load %arg2[%c0_1, %c0_2] : memref<32x16xf32, #tpu.memory_space<vmem>>, vector<32x16xf32>
    %c0_3 = arith.constant 0 : index
    %c0_4 = arith.constant 0 : index
    %2 = vector.load %arg3[%c0_3, %c0_4] : memref<32x1xf32, #tpu.memory_space<vmem>>, vector<32x1xf32>
    %cst = arith.constant dense<0.000000e+00> : vector<32x128xf32>
    %3 = tpu.matmul %1, %0, %cst {dimension_numbers = #tpu.dot_dimension_numbers<[1], [0], [0], [1], [0, 0, 1, 1], [], []>} : vector<32x16xf32>, vector<16x128xf32>, vector<32x128xf32> -> vector<32x128xf32>
    %4 = vector.broadcast %2 : vector<32x1xf32> to vector<32x128xf32>
    %5 = arith.addf %3, %4 : vector<32x128xf32>
    %6 = math.tanh %5 : vector<32x128xf32>
    %c0_5 = arith.constant 0 : index
    %c0_6 = arith.constant 0 : index
    %7 = vector.load %arg4[%c0_5, %c0_6] : memref<32x32xf32, #tpu.memory_space<vmem>>, vector<32x32xf32>
    %c0_7 = arith.constant 0 : index
    %c0_8 = arith.constant 0 : index
    %8 = vector.load %arg5[%c0_7, %c0_8] : memref<32x1xf32, #tpu.memory_space<vmem>>, vector<32x1xf32>
    %cst_9 = arith.constant dense<0.000000e+00> : vector<32x128xf32>
    %9 = tpu.matmul %7, %6, %cst_9 {dimension_numbers = #tpu.dot_dimension_numbers<[1], [0], [0], [1], [0, 0, 1, 1], [], []>} : vector<32x32xf32>, vector<32x128xf32>, vector<32x128xf32> -> vector<32x128xf32>
    %10 = vector.broadcast %8 : vector<32x1xf32> to vector<32x128xf32>
    %11 = arith.addf %9, %10 : vector<32x128xf32>
    %12 = math.tanh %11 : vector<32x128xf32>
    %c0_10 = arith.constant 0 : index
    %c0_11 = arith.constant 0 : index
    %13 = vector.load %arg6[%c0_10, %c0_11] : memref<1x32xf32, #tpu.memory_space<vmem>>, vector<1x32xf32>
    %c0_12 = arith.constant 0 : index
    %c0_13 = arith.constant 0 : index
    %14 = vector.load %arg7[%c0_12, %c0_13] : memref<1x1xf32, #tpu.memory_space<vmem>>, vector<1x1xf32>
    %cst_14 = arith.constant dense<0.000000e+00> : vector<1x128xf32>
    %15 = tpu.matmul %13, %12, %cst_14 {dimension_numbers = #tpu.dot_dimension_numbers<[1], [0], [0], [1], [0, 0, 1, 1], [], []>} : vector<1x32xf32>, vector<32x128xf32>, vector<1x128xf32> -> vector<1x128xf32>
    %16 = vector.broadcast %14 : vector<1x1xf32> to vector<1x128xf32>
    %17 = arith.addf %15, %16 : vector<1x128xf32>
    %c0_15 = arith.constant 0 : index
    %c0_16 = arith.constant 0 : index
    %18 = vector.load %arg8[%c0_15, %c0_16] : memref<1x128xf32, #tpu.memory_space<vmem>>, vector<1x128xf32>
    tpu.vector_store %arg8[%c0_15, %c0_16], %17 {strides = array<i32>} : memref<1x128xf32, #tpu.memory_space<vmem>>, vector<1x128xf32>,
    return
  }
  func.func @transform_0(%arg0: i32) -> (i32, i32) {
    %c0_i32 = arith.constant 0 : i32
    %c0_i32_0 = arith.constant 0 : i32
    return %c0_i32, %arg0 : i32, i32
  }
  func.func @transform_1(%arg0: i32) -> (i32, i32) {
    %c0_i32 = arith.constant 0 : i32
    %c0_i32_0 = arith.constant 0 : i32
    %c0_i32_1 = arith.constant 0 : i32
    return %c0_i32, %c0_i32_0 : i32, i32
  }
  func.func @transform_2(%arg0: i32) -> (i32, i32) {
    %c0_i32 = arith.constant 0 : i32
    %c0_i32_0 = arith.constant 0 : i32
    %c0_i32_1 = arith.constant 0 : i32
    return %c0_i32, %c0_i32_0 : i32, i32
  }
  func.func @transform_3(%arg0: i32) -> (i32, i32) {
    %c0_i32 = arith.constant 0 : i32
    %c0_i32_0 = arith.constant 0 : i32
    %c0_i32_1 = arith.constant 0 : i32
    return %c0_i32, %c0_i32_0 : i32, i32
  }
  func.func @transform_4(%arg0: i32) -> (i32, i32) {
    %c0_i32 = arith.constant 0 : i32
    %c0_i32_0 = arith.constant 0 : i32
    %c0_i32_1 = arith.constant 0 : i32
    return %c0_i32, %c0_i32_0 : i32, i32
  }
  func.func @transform_5(%arg0: i32) -> (i32, i32) {
    %c0_i32 = arith.constant 0 : i32
    %c0_i32_0 = arith.constant 0 : i32
    %c0_i32_1 = arith.constant 0 : i32
    return %c0_i32, %c0_i32_0 : i32, i32
  }
  func.func @transform_6(%arg0: i32) -> (i32, i32) {
    %c0_i32 = arith.constant 0 : i32
    %c0_i32_0 = arith.constant 0 : i32
    %c0_i32_1 = arith.constant 0 : i32
    return %c0_i32, %c0_i32_0 : i32, i32
  }
  func.func @transform_7(%arg0: i32) -> (i32, i32) {
    %c0_i32 = arith.constant 0 : i32
    %c0_i32_0 = arith.constant 0 : i32
    return %c0_i32, %arg0 : i32, i32
  }
}

</mosaic_0001>

<bundles_post_ra>
// kernel: _mlp_forward_impl.1
= control target key start
LH: loop header
LB: loop body
LE: loop exit
PB: predicated region body
PF: predicated region fallthrough
CT: control target
= control target key end

     0   :  { %s1171_s0 = inlined_call_operand.vmem [shape: f32[16,256], index: 0, kind: input, shape index: {}]   ;;  %s1172_s1 = inlined_call_operand.vmem [shape: f32[32,16], index: 1, kind: input, shape index: {}]   ;;  %s1173_s2 = inlined_call_operand.vmem [shape: f32[32,1], index: 2, kind: input, shape index: {}]   ;;  %s1174_s3 = inlined_call_operand.vmem [shape: f32[32,32], index: 3, kind: input, shape index: {}]   ;;  %s1175_s4 = inlined_call_operand.vmem [shape: f32[32,1], index: 4, kind: input, shape index: {}]   ;;  %s1176_s5 = inlined_call_operand.vmem [shape: f32[1,32], index: 5, kind: input, shape index: {}]   ;;  %s1177_s6 = inlined_call_operand.<no memory space> [shape: f32[1,1], index: 6, kind: input, shape index: {}]   ;;  %s1178_s7 = inlined_call_operand.hbm [shape: f32[1,256], index: 7, kind: output, shape index: {}]  }
   0x1   :  { %v12_v0 = vstv %s1177_s6 }
   0x2   :  { %13 = vst [vmem:[#allocation2] sm:$0x1] %v12_v0 }
   0x3   :  { %14 = vsyncpa [#allocation5], 0 }
   0x4   :  { %16 = vsyncpa [#allocation5 + $0x1], 0  ;;  %s1001_s26 = smov 0   ;;  %s1003_s27 = smov 0  }
   0x5   :  { %s1005_s28 = smov 0   ;;  %s1007_s29 = smov 0  }
   0x6 LB: > { %s736_s6 = sadd.s32 4294967295, %s951_s29   ;;  %s737_s30 = sadd.s32 4294967294, %s951_s29   ;;  %s951_s29 = sphi %s1007_s29, %s1184_s29   ;;  %s947_s28 = sphi %s1005_s28, %s1183_s28   ;;  %s943_s27 = sphi %s1003_s27, %s1182_s27   ;;  %s939_s26 = sphi %s1001_s26, %s1181_s26  }
   0x7   : > { %s1024_s8 = sadd.s32 1, %s951_s29   ;;  %s29_s9 = sadd.s32 1, %s947_s28 }
   0x8   : > { %s26_s10 = ssub.s32 %s951_s29, %s1024_s8  ;;  %p36_p0 = scmp.ne.s32.totalorder %s947_s28, %s943_s27 }
   0x9   : > { %p27_p1 = scmp.eq.s32.totalorder %s26_s10, 0  ;;  %p37_p2 = scmp.eq.s32.totalorder %s951_s29, 0 }
   0xa   : > { %p192_p3 = scmp.eq.s32.totalorder %s736_s6, 1  ;;  %p197_p4 = scmp.ne.s32.totalorder %s943_s27, %s939_s26 }
   0xb   : > { %s1037_s11 = scalar_select %p27_p1, %s947_s28, %s29_s9  }
   0xc   : > { %p38_p5 = por %p37_p2, %p36_p0  ;;  %p1039_p6 = por %p192_p3, %p36_p0 }
   0xd   : > { %p198_p7 = scmp.eq.s32.totalorder %s737_s30, 1  ;;  %p739_p9 = scmp.ge.s32.totalorder %s951_s29, 2 }
   0xf   : > { %p1043_p8 = por %p198_p7, %p197_p4  ;;  %232 = sbr.rel (%p739_p9) target bundleno = 29 (0x1d), region = 40 }
  0x16   : > { %235 = sbr.rel (!%p38_p5) target bundleno = 29 (0x1d), region = 44  ;;  %s237_s14 = sand.u32 (%p38_p5), 1, %s947_s28  }
  0x17   : > { %s741_s15 = sshll.u32 (%p38_p5), %s951_s29, 3  ;;  %s740_s16 = sshll.u32 (%p38_p5), %s237_s14, 4 }
  0x18   : > { %s241_s19 = scalar_lea.vmem (%p38_p5), %s1171_s0, %s741_s15  ;;  %s239_s20 = scalar_lea.vmem (%p38_p5), [#allocation3], %s740_s16 }
  0x19   : > { %v271_v1 = vld [vmem:[%s241_s19] sm:$0xff] (%p38_p5)  ;;  %v273_v2 = vld [vmem:[%s241_s19 + $0x10] sm:$0xff] (%p38_p5) }
  0x1a   : > { %272 = vst [vmem:[%s239_s20] sm:$0xff] (%p38_p5), %v271_v1  ;;  %274 = vst [vmem:[%s239_s20 + $0x8] sm:$0xff] (%p38_p5), %v273_v2 }
  0x1d PF: > { %p742_p10 = scmp.ge.s32.totalorder %s951_s29, 1  ;;  %p279_p11 = scmp.lt.s32.totalorder %s951_s29, 3 }
  0x1f   : > { %p280_p12 = pnand %p742_p10, %p279_p11 }
  0x20   : > { %s1058_s21 = sand.u32 (!%p280_p12), 1, %s943_s27   ;;  %v318_v3 = vld [vmem:[%s1172_s1] sm:$0xff] (!%p280_p12)  ;;  %vm346_vm0 = vcmask (!%p280_p12), 130048   ;;  %v953_v4 = vmov (!%p280_p12), 0   ;;  %v324_v6 = vld [vmem:[%s1173_s2 + $0x10] sm:$0xff] (!%p280_p12)  ;;  %v323_v9 = vld [vmem:[%s1173_s2 + $0x8] sm:$0xff] (!%p280_p12)  ;;  %v585_v63 = vlaneseq (!%p280_p12) }
  0x21   : > { %283 = sbr.rel (%p280_p12) target bundleno = 741 (0x2e5), region = 82  ;;  %s743_s24 = sshll.u32 (!%p280_p12), %s1058_s21, 4  ;;  %779 = vmatprep.mubr.msk.f32.mxu0 (!%p280_p12), %vm346_vm0, %v318_v3  ;;  %871 = vset.pattern.permute.xlu0 (!%p280_p12), %v953_v4  ;;  %v322_v5 = vld [vmem:[%s1173_s2] sm:$0xff] (!%p280_p12)  ;;  %v325_v11 = vld [vmem:[%s1173_s2 + $0x18] sm:$0xff] (!%p280_p12)  ;;  %v319_v12 = vld [vmem:[%s1172_s1 + $0x8] sm:$0xff] (!%p280_p12)  ;;  %vm476_vm1 = vcmask (!%p280_p12), 261120  }
  0x22   : > { %328 = vperm.xlu0 (!%p280_p12), %871, %v322_v5   ;;  %872 = vset.pattern.permute.xlu1 (!%p280_p12), %v953_v4  ;;  %s288_s14 = scalar_lea.vmem (!%p280_p12), [#allocation3], %s743_s24  ;;  %v452_v13 = vld [vmem:[%s1175_s4] sm:$0xff] (!%p280_p12)  ;;  %v320_v14 = vld [vmem:[%s1172_s1 + $0x10] sm:$0xff] (!%p280_p12)  ;;  %v453_v15 = vld [vmem:[%s1175_s4 + $0x8] sm:$0xff] (!%p280_p12)  ;;  %v954_v42 = vmov (!%p280_p12), 0.0|0.0   ;;  %vm955_vm2 = vmmov (!%p280_p12), 0  }
  0x23   : > { %v316_v7 = vld [vmem:[%s288_s14] sm:$0xff] (!%p280_p12)  ;;  %v317_v8 = vld [vmem:[%s288_s14 + $0x8] sm:$0xff] (!%p280_p12)  ;;  %338 = vperm.xlu1 (!%p280_p12), %872, %v324_v6   ;;  %v956_v43 = vmov (!%p280_p12), 0.0   ;;  %v586_v0 = vshrl.u32 (!%p280_p12), %v585_v63, 7  ;;  %s753_s15 = sshll.u32 (!%p280_p12), %s736_s6, 4  ;;  %s315_s16 = scalar_lea.vmem (!%p280_p12), [#allocation4], %s1058_s21 }
  0x24   : > { %v810_v10 = vpack.c.bf16 (!%p280_p12), %v317_v8, %v316_v7  ;;  %v321_v16 = vld [vmem:[%s1172_s1 + $0x18] sm:$0xff] (!%p280_p12)  ;;  %v454_v17 = vld [vmem:[%s1175_s4 + $0x10] sm:$0xff] (!%p280_p12)  ;;  %v579_v19 = vld [vmem:[#allocation2] sm:$0x1] (!%p280_p12)  ;;  %s676_s17 = sshll.u32 (!%p280_p12), %s315_s16, 4  ;;  %s1127_s20 = scalar_lea.hbm (!%p280_p12), %s1178_s7, %s753_s15  ;;  %s1129_s17 = int_to_ptr.vmem [resolvable:$true] %s676_s17 }
  0x25   : > { %v455_v18 = vld [vmem:[%s1175_s4 + $0x18] sm:$0xff] (!%p280_p12)  ;;  %v448_v20 = vld [vmem:[%s1174_s3] sm:$0xff] (!%p280_p12)  ;;  %v449_v39 = vld [vmem:[%s1174_s3 + $0x8] sm:$0xff] (!%p280_p12)  ;;  %v587_v1 = vsub.s32 (!%p280_p12), 0, %v586_v0  ;;  %s664_s22 = scalar_lea.sflag (!%p280_p12), [#allocation5], %s1058_s21  ;;  %s889_s23 = scalar_lea.vmem (!%p280_p12), %s1129_s17, 16 }
  0x26   : > { %811 = vmatprep.subr.bf16.mxu0 (!%p280_p12), %v810_v10  ;;  %333 = vperm.xlu0 (!%p280_p12), %871, %v323_v9   ;;  %v450_v40 = vld [vmem:[%s1174_s3 + $0x10] sm:$0xff] (!%p280_p12)  ;;  %v451_v41 = vld [vmem:[%s1174_s3 + $0x18] sm:$0xff] (!%p280_p12)  ;;  %v578_v62 = vld [vmem:[%s1176_s5] sm:$0x1] (!%p280_p12)  ;;  %p890_p13 = scmp.ne.s32.totalorder (!%p280_p12), %s1129_s17, %s889_s23  ;;  %s957_s6 = smov (!%p280_p12), [#allocation4]  }
  0x27   : > { %813 = vmatpush3.bf16.msra.mxu0 (!%p280_p12), %v810_v10  ;;  %343 = vperm.xlu1 (!%p280_p12), %872, %v325_v11   ;;  %s893_s24 = sshll.u32 (!%p280_p12), %s957_s6, 4  ;;  %s894_s24 = int_to_ptr.vmem [resolvable:$false] %s893_s24 }
  0x28   : > { %793 = vmatprep.mubr.msk.f32.mxu1 %vm476_vm1, %v448_v20  ;;  %822 = vmatprep.subr.bf16.mxu0 %v954_v42  ;;  %p891_p0 = pnand %p890_p13, %p1039_p6  ;;  %s895_s25 = scalar_lea.vmem %s894_s24, 32 }
  0x29   : > { %p896_p2 = scmp.lt.s32.totalorder %s1129_s17, %s894_s24  ;;  %p897_p3 = scmp.lt.s32.totalorder %s895_s25, %s889_s23 }
  0x2a   : > { %780 = vmatmul.mubr.msk.f32.vlgmr.msra.gmra.mrb[0].mxu0 %vm346_vm0, %v319_v12  ;;  %458 = vperm.xlu0 %871, %v452_v13   ;;  %p892_p1 = pneg %p891_p0 }
  0x2b   : > { %782 = vmatprep.mubr.msk.f32.mxu0 %vm346_vm0, %v320_v14  ;;  %463 = vperm.xlu1 %872, %v453_v15   ;;  %p898_p4 = por %p897_p3, %p896_p2 }
  0x2d   : > { %p899_p5 = pnand %p898_p4, %p892_p1 }
  0x2e   : > { %783 = vmatmul.mubr.msk.f32.gmra.mrb[2].mxu0 %vm346_vm0, %v321_v16  ;;  %468 = vperm.xlu0 %871, %v454_v17  }
  0x2f   : > { %473 = vperm.xlu1 %872, %v455_v18   ;;  %807 = vmatprep.mubr.msk.f32.mxu0 %vm955_vm2, %v956_v43 }
  0x32   : > { %582 = vperm.xlu0 %871, %v579_v19  }
  0xa1   : > { %v329_v21 = vpop.permute.xlu0 %328 }
  0xa2   : > { %v339_v22 = vpop.permute.xlu1 %338 }
  0xa5   : > { %v334_v23 = vpop.permute.xlu0 %333 }
  0xa6   : > { %v344_v28 = vpop.permute.xlu1 %343 }
  0xa9   : > { %v459_v45 = vpop.permute.xlu0 %458 }
  0xaa   : > { %v464_v44 = vpop.permute.xlu1 %463 }
  0xad   : > { %v469_v52 = vpop.permute.xlu0 %468 }
  0xae   : > { %v474_v50 = vpop.permute.xlu1 %473 }
  0xb1   : > { %v583_v2 = vpop.permute.xlu0 %582 }
  0xb2   : > { %v588_v3 = vrot.slane %v583_v2, %v587_v1 }
  0xfd   : > { %v781_v24 = vpop.f32.mrb[0].mxu0 }
  0xfe   : > { %v431_v25 = vadd.f32 %v781_v24, %v334_v23  ;;  %v425_v26 = vpop.f32.mrb[1].mxu0 }
  0xff   : > { %v426_v27 = vadd.f32 %v425_v26, %v329_v21 }
 0x100   : > { %873 = vtanh.f32 %v431_v25 }
 0x101   : > { %875 = vtanh.f32 %v426_v27  ;;  %v784_v29 = vpop.f32.mrb[2].mxu0 }
 0x102   : > { %v441_v30 = vadd.f32 %v784_v29, %v344_v28  ;;  %v435_v31 = vpop.f32.mrb[3].mxu0 }
 0x103   : > { %v436_v32 = vadd.f32 %v435_v31, %v339_v22 }
 0x104   : > { %877 = vtanh.f32 %v441_v30 }
 0x105   : > { %879 = vtanh.f32 %v436_v32 }
 0x10a   : > { %v874_v33 = vpop.eup %873 }
 0x10b   : > { %v876_v34 = vpop.eup %875 }
 0x10c   : > { %v814_v35 = vpack.c.bf16 %v874_v33, %v876_v34 }
 0x10e   : > { %v878_v36 = vpop.eup %877  ;;  %815 = vmatprep.subr.bf16.mxu1 %v814_v35 }
 0x10f   : > { %v880_v37 = vpop.eup %879  ;;  %817 = vmatpush3.bf16.msra.mxu1 %v814_v35 }
 0x110   : > { %v818_v38 = vpack.c.bf16 %v878_v36, %v880_v37 }
 0x112   : > { %819 = vmatprep.subr.bf16.mxu1 %v818_v38 }
 0x113   : > { %821 = vmatpush3.bf16.msra.mxu1 %v818_v38 }
 0x116   : > { %794 = vmatmul.mubr.msk.f32.vlgmr.msra.gmra.mrb[0].mxu1 %vm476_vm1, %v449_v39 }
 0x117   : > { %796 = vmatprep.mubr.msk.f32.mxu1 %vm476_vm1, %v450_v40 }
 0x11a   : > { %797 = vmatmul.mubr.msk.f32.gmra.mrb[2].mxu1 %vm476_vm1, %v451_v41 }
 0x1e9   : > { %v795_v46 = vpop.f32.mrb[0].mxu1 }
 0x1ea   : > { %v561_v47 = vadd.f32 %v795_v46, %v464_v44  ;;  %v555_v48 = vpop.f32.mrb[1].mxu1 }
 0x1eb   : > { %v556_v49 = vadd.f32 %v555_v48, %v459_v45 }
 0x1ec   : > { %881 = vtanh.f32 %v561_v47 }
 0x1ed   : > { %883 = vtanh.f32 %v556_v49  ;;  %v798_v51 = vpop.f32.mrb[2].mxu1 }
 0x1ee   : > { %v571_v53 = vadd.f32 %v798_v51, %v474_v50  ;;  %v565_v54 = vpop.f32.mrb[3].mxu1 }
 0x1ef   : > { %v566_v55 = vadd.f32 %v565_v54, %v469_v52 }
 0x1f0   : > { %885 = vtanh.f32 %v571_v53 }
 0x1f1   : > { %887 = vtanh.f32 %v566_v55 }
 0x1f6   : > { %v882_v56 = vpop.eup %881 }
 0x1f7   : > { %v884_v57 = vpop.eup %883 }
 0x1f8   : > { %v823_v58 = vpack.c.bf16 %v882_v56, %v884_v57 }
 0x1fa   : > { %v886_v59 = vpop.eup %885  ;;  %824 = vmatpush3.bf16.msra.mxu0 %v823_v58 }
 0x1fb   : > { %v888_v60 = vpop.eup %887  ;;  %825 = vmatprep.subr.bf16.mxu0 %v954_v42 }
 0x1fc   : > { %v826_v61 = vpack.c.bf16 %v886_v59, %v888_v60 }
 0x1fe   : > { %827 = vmatpush3.bf16.msra.mxu0 %v826_v61 }
 0x201   : > { %808 = vmatmul.mubr.msk.f32.vlgmr.msra.gmra.mrb[4].mxu0 %vm476_vm1, %v578_v62 }
 0x2d4   : > { %v658_v4 = vpop.f32.mrb[4].mxu0 }
 0x2d5   : > { %v659_v5 = vadd.f32 %v658_v4, %v588_v3  ;;  %v809_v6 = vpop.f32.mrb[5].mxu0 }
 0x2d7   : > { %662 = vst [vmem:[%s315_s16] sm:$0x1] %v659_v5 }
 0x2d8   : > { %902 = shalt.err (!%p899_p5)
}
 0x2d9   : > { %s903_s21 = scalar_lea.hbm %s1127_s20, 16  ;;  %s907_s10 = scalar_lea.hbm %s1178_s7, 32 }
 0x2da   : > { %p904_p7 = scmp.ne.s32.totalorder %s1127_s20, %s903_s21  ;;  %p908_p12 = scmp.lt.u32.totalorder %s1127_s20, %s1178_s7 }
 0x2db   : > { %p909_p13 = scmp.lt.u32.totalorder %s907_s10, %s903_s21  ;;  %p911_p1 = scmp.lt.u32.totalorder %s903_s21, %s1127_s20 }
 0x2dc   : > { %p905_p10 = pnand %p904_p7, %p1039_p6 }
 0x2dd   : > { %p910_p0 = por %p909_p13, %p908_p12 }
 0x2de   : > { %p906_p11 = pneg %p905_p10 }
 0x2df   : > { %p912_p2 = por %p911_p1, %p910_p0 }
 0x2e1   : > { %p913_p3 = pnand %p912_p2, %p906_p11 }
 0x2e3   : > { %916 = shalt.err (!%p913_p3)
}
 0x2e4   : > { %828 = dma.vmem_to_hbm [thread:$0]  (%p1039_p6), %s1129_s17, 16, %s1127_s20, %s664_s22  }
 0x2e5 PF: > { %s688_s16 = sand.u32 1, %s939_s26   ;;  %p831_p4 = pnand %p739_p9, %p1043_p8 }
 0x2e6   : > { %s689_s18 = scalar_lea.sflag [#allocation5], %s688_s16 }
 0x2e7   : > { %934 = dma.done.wait (!%p831_p4), %s689_s18, 16  }
 0x2e8   : > { %936 = vsyncadd (!%p831_p4), %s689_s18, 4294967280  ;;  %p19_p5 = scmp.ge.s32.totalorder %s1024_s8, 4   ;;  %s1181_s26 = smov %s943_s27 }
 0x2e9   : > { %s1182_s27 = smov %s947_s28  ;;  %s1183_s28 = smov %s1037_s11 }
 0x2ea   : > { %s1184_s29 = smov %s1024_s8  ;;  %21 = sbr.rel (!%p19_p5) target bundleno = 6 (0x6), region = 126 }
 0x2f1   :  { %693 = vsyncpa [#allocation5], 1 }
 0x2f2   :  { %695 = vsyncpa [#allocation5 + $0x1], 1 }

// kernel: _mlp_forward_impl.1
= control target key start
LH: loop header
LB: loop body
LE: loop exit
PB: predicated region body
PF: predicated region fallthrough
CT: control target
= control target key end

     0   :  { %s1171_s0 = inlined_call_operand.vmem [shape: f32[16,256], index: 0, kind: input, shape index: {}]   ;;  %s1172_s1 = inlined_call_operand.vmem [shape: f32[32,16], index: 1, kind: input, shape index: {}]   ;;  %s1173_s2 = inlined_call_operand.vmem [shape: f32[32,1], index: 2, kind: input, shape index: {}]   ;;  %s1174_s3 = inlined_call_operand.vmem [shape: f32[32,32], index: 3, kind: input, shape index: {}]   ;;  %s1175_s4 = inlined_call_operand.vmem [shape: f32[32,1], index: 4, kind: input, shape index: {}]   ;;  %s1176_s5 = inlined_call_operand.vmem [shape: f32[1,32], index: 5, kind: input, shape index: {}]   ;;  %s1177_s6 = inlined_call_operand.<no memory space> [shape: f32[1,1], index: 6, kind: input, shape index: {}]   ;;  %s1178_s7 = inlined_call_operand.hbm [shape: f32[1,256], index: 7, kind: output, shape index: {}]  }
   0x1   :  { %v12_v0 = vstv %s1177_s6 }
   0x2   :  { %13 = vst [vmem:[#allocation2] sm:$0x1] %v12_v0 }
   0x3   :  { %14 = vsyncpa [#allocation5], 0 }
   0x4   :  { %16 = vsyncpa [#allocation5 + $0x1], 0  ;;  %s1001_s26 = smov 0   ;;  %s1003_s27 = smov 0  }
   0x5   :  { %s1005_s28 = smov 0   ;;  %s1007_s29 = smov 0  }
   0x6 LB: > { %s736_s6 = sadd.s32 4294967295, %s951_s29   ;;  %s737_s30 = sadd.s32 4294967294, %s951_s29   ;;  %s951_s29 = sphi %s1007_s29, %s1184_s29   ;;  %s947_s28 = sphi %s1005_s28, %s1183_s28   ;;  %s943_s27 = sphi %s1003_s27, %s1182_s27   ;;  %s939_s26 = sphi %s1001_s26, %s1181_s26  }
   0x7   : > { %s1024_s8 = sadd.s32 1, %s951_s29   ;;  %s29_s9 = sadd.s32 1, %s947_s28 }
   0x8   : > { %s26_s10 = ssub.s32 %s951_s29, %s1024_s8  ;;  %p36_p0 = scmp.ne.s32.totalorder %s947_s28, %s943_s27 }
   0x9   : > { %p27_p1 = scmp.eq.s32.totalorder %s26_s10, 0  ;;  %p37_p2 = scmp.eq.s32.totalorder %s951_s29, 0 }
   0xa   : > { %p192_p3 = scmp.eq.s32.totalorder %s736_s6, 1  ;;  %p197_p4 = scmp.ne.s32.totalorder %s943_s27, %s939_s26 }
   0xb   : > { %s1037_s11 = scalar_select %p27_p1, %s947_s28, %s29_s9  }
   0xc   : > { %p38_p5 = por %p37_p2, %p36_p0  ;;  %p1039_p6 = por %p192_p3, %p36_p0 }
   0xd   : > { %p198_p7 = scmp.eq.s32.totalorder %s737_s30, 1  ;;  %p739_p9 = scmp.ge.s32.totalorder %s951_s29, 2 }
   0xf   : > { %p1043_p8 = por %p198_p7, %p197_p4  ;;  %232 = sbr.rel (%p739_p9) target bundleno = 29 (0x1d), region = 40 }
  0x16   : > { %235 = sbr.rel (!%p38_p5) target bundleno = 29 (0x1d), region = 44  ;;  %s237_s14 = sand.u32 (%p38_p5), 1, %s947_s28  }
  0x17   : > { %s741_s15 = sshll.u32 (%p38_p5), %s951_s29, 3  ;;  %s740_s16 = sshll.u32 (%p38_p5), %s237_s14, 4 }
  0x18   : > { %s241_s19 = scalar_lea.vmem (%p38_p5), %s1171_s0, %s741_s15  ;;  %s239_s20 = scalar_lea.vmem (%p38_p5), [#allocation3], %s740_s16 }
  0x19   : > { %v271_v1 = vld [vmem:[%s241_s19] sm:$0xff] (%p38_p5)  ;;  %v273_v2 = vld [vmem:[%s241_s19 + $0x10] sm:$0xff] (%p38_p5) }
  0x1a   : > { %272 = vst [vmem:[%s239_s20] sm:$0xff] (%p38_p5), %v271_v1  ;;  %274 = vst [vmem:[%s239_s20 + $0x8] sm:$0xff] (%p38_p5), %v273_v2 }
  0x1d PF: > { %p742_p10 = scmp.ge.s32.totalorder %s951_s29, 1  ;;  %p279_p11 = scmp.lt.s32.totalorder %s951_s29, 3 }
  0x1f   : > { %p280_p12 = pnand %p742_p10, %p279_p11 }
  0x20   : > { %s1058_s21 = sand.u32 (!%p280_p12), 1, %s943_s27   ;;  %v318_v3 = vld [vmem:[%s1172_s1] sm:$0xff] (!%p280_p12)  ;;  %vm346_vm0 = vcmask (!%p280_p12), 130048   ;;  %v953_v4 = vmov (!%p280_p12), 0   ;;  %v324_v6 = vld [vmem:[%s1173_s2 + $0x10] sm:$0xff] (!%p280_p12)  ;;  %v323_v9 = vld [vmem:[%s1173_s2 + $0x8] sm:$0xff] (!%p280_p12)  ;;  %v585_v63 = vlaneseq (!%p280_p12) }
  0x21   : > { %283 = sbr.rel (%p280_p12) target bundleno = 741 (0x2e5), region = 82  ;;  %s743_s24 = sshll.u32 (!%p280_p12), %s1058_s21, 4  ;;  %779 = vmatprep.mubr.msk.f32.mxu0 (!%p280_p12), %vm346_vm0, %v318_v3  ;;  %871 = vset.pattern.permute.xlu0 (!%p280_p12), %v953_v4  ;;  %v322_v5 = vld [vmem:[%s1173_s2] sm:$0xff] (!%p280_p12)  ;;  %v325_v11 = vld [vmem:[%s1173_s2 + $0x18] sm:$0xff] (!%p280_p12)  ;;  %v319_v12 = vld [vmem:[%s1172_s1 + $0x8] sm:$0xff] (!%p280_p12)  ;;  %vm476_vm1 = vcmask (!%p280_p12), 261120  }
  0x22   : > { %328 = vperm.xlu0 (!%p280_p12), %871, %v322_v5   ;;  %872 = vset.pattern.permute.xlu1 (!%p280_p12), %v953_v4  ;;  %s288_s14 = scalar_lea.vmem (!%p280_p12), [#allocation3], %s743_s24  ;;  %v452_v13 = vld [vmem:[%s1175_s4] sm:$0xff] (!%p280_p12)  ;;  %v320_v14 = vld [vmem:[%s1172_s1 + $0x10] sm:$0xff] (!%p280_p12)  ;;  %v453_v15 = vld [vmem:[%s1175_s4 + $0x8] sm:$0xff] (!%p280_p12)  ;;  %v954_v42 = vmov (!%p280_p12), 0.0|0.0   ;;  %vm955_vm2 = vmmov (!%p280_p12), 0  }
  0x23   : > { %v316_v7 = vld [vmem:[%s288_s14] sm:$0xff] (!%p280_p12)  ;;  %v317_v8 = vld [vmem:[%s288_s14 + $0x8] sm:$0xff] (!%p280_p12)  ;;  %338 = vperm.xlu1 (!%p280_p12), %872, %v324_v6   ;;  %v956_v43 = vmov (!%p280_p12), 0.0   ;;  %v586_v0 = vshrl.u32 (!%p280_p12), %v585_v63, 7  ;;  %s753_s15 = sshll.u32 (!%p280_p12), %s736_s6, 4  ;;  %s315_s16 = scalar_lea.vmem (!%p280_p12), [#allocation4], %s1058_s21 }
  0x24   : > { %v810_v10 = vpack.c.bf16 (!%p280_p12), %v317_v8, %v316_v7  ;;  %v321_v16 = vld [vmem:[%s1172_s1 + $0x18] sm:$0xff] (!%p280_p12)  ;;  %v454_v17 = vld [vmem:[%s1175_s4 + $0x10] sm:$0xff] (!%p280_p12)  ;;  %v579_v19 = vld [vmem:[#allocation2] sm:$0x1] (!%p280_p12)  ;;  %s676_s17 = sshll.u32 (!%p280_p12), %s315_s16, 4  ;;  %s1127_s20 = scalar_lea.hbm (!%p280_p12), %s1178_s7, %s753_s15  ;;  %s1129_s17 = int_to_ptr.vmem [resolvable:$true] %s676_s17 }
  0x25   : > { %v455_v18 = vld [vmem:[%s1175_s4 + $0x18] sm:$0xff] (!%p280_p12)  ;;  %v448_v20 = vld [vmem:[%s1174_s3] sm:$0xff] (!%p280_p12)  ;;  %v449_v39 = vld [vmem:[%s1174_s3 + $0x8] sm:$0xff] (!%p280_p12)  ;;  %v587_v1 = vsub.s32 (!%p280_p12), 0, %v586_v0  ;;  %s664_s22 = scalar_lea.sflag (!%p280_p12), [#allocation5], %s1058_s21  ;;  %s889_s23 = scalar_lea.vmem (!%p280_p12), %s1129_s17, 16 }
  0x26   : > { %811 = vmatprep.subr.bf16.mxu0 (!%p280_p12), %v810_v10  ;;  %333 = vperm.xlu0 (!%p280_p12), %871, %v323_v9   ;;  %v450_v40 = vld [vmem:[%s1174_s3 + $0x10] sm:$0xff] (!%p280_p12)  ;;  %v451_v41 = vld [vmem:[%s1174_s3 + $0x18] sm:$0xff] (!%p280_p12)  ;;  %v578_v62 = vld [vmem:[%s1176_s5] sm:$0x1] (!%p280_p12)  ;;  %p890_p13 = scmp.ne.s32.totalorder (!%p280_p12), %s1129_s17, %s889_s23  ;;  %s957_s6 = smov (!%p280_p12), [#allocation4]  }
  0x27   : > { %813 = vmatpush3.bf16.msra.mxu0 (!%p280_p12), %v810_v10  ;;  %343 = vperm.xlu1 (!%p280_p12), %872, %v325_v11   ;;  %s893_s24 = sshll.u32 (!%p280_p12), %s957_s6, 4  ;;  %s894_s24 = int_to_ptr.vmem [resolvable:$false] %s893_s24 }
  0x28   : > { %793 = vmatprep.mubr.msk.f32.mxu1 %vm476_vm1, %v448_v20  ;;  %822 = vmatprep.subr.bf16.mxu0 %v954_v42  ;;  %p891_p0 = pnand %p890_p13, %p1039_p6  ;;  %s895_s25 = scalar_lea.vmem %s894_s24, 32 }
  0x29   : > { %p896_p2 = scmp.lt.s32.totalorder %s1129_s17, %s894_s24  ;;  %p897_p3 = scmp.lt.s32.totalorder %s895_s25, %s889_s23 }
  0x2a   : > { %780 = vmatmul.mubr.msk.f32.vlgmr.msra.gmra.mrb[0].mxu0 %vm346_vm0, %v319_v12  ;;  %458 = vperm.xlu0 %871, %v452_v13   ;;  %p892_p1 = pneg %p891_p0 }
  0x2b   : > { %782 = vmatprep.mubr.msk.f32.mxu0 %vm346_vm0, %v320_v14  ;;  %463 = vperm.xlu1 %872, %v453_v15   ;;  %p898_p4 = por %p897_p3, %p896_p2 }
  0x2d   : > { %p899_p5 = pnand %p898_p4, %p892_p1 }
  0x2e   : > { %783 = vmatmul.mubr.msk.f32.gmra.mrb[2].mxu0 %vm346_vm0, %v321_v16  ;;  %468 = vperm.xlu0 %871, %v454_v17  }
  0x2f   : > { %473 = vperm.xlu1 %872, %v455_v18   ;;  %807 = vmatprep.mubr.msk.f32.mxu0 %vm955_vm2, %v956_v43 }
  0x32   : > { %582 = vperm.xlu0 %871, %v579_v19  }
  0xa1   : > { %v329_v21 = vpop.permute.xlu0 %328 }
  0xa2   : > { %v339_v22 = vpop.permute.xlu1 %338 }
  0xa5   : > { %v334_v23 = vpop.permute.xlu0 %333 }
  0xa6   : > { %v344_v28 = vpop.permute.xlu1 %343 }
  0xa9   : > { %v459_v45 = vpop.permute.xlu0 %458 }
  0xaa   : > { %v464_v44 = vpop.permute.xlu1 %463 }
  0xad   : > { %v469_v52 = vpop.permute.xlu0 %468 }
  0xae   : > { %v474_v50 = vpop.permute.xlu1 %473 }
  0xb1   : > { %v583_v2 = vpop.permute.xlu0 %582 }
  0xb2   : > { %v588_v3 = vrot.slane %v583_v2, %v587_v1 }
  0xfd   : > { %v781_v24 = vpop.f32.mrb[0].mxu0 }
  0xfe   : > { %v431_v25 = vadd.f32 %v781_v24, %v334_v23  ;;  %v425_v26 = vpop.f32.mrb[1].mxu0 }
  0xff   : > { %v426_v27 = vadd.f32 %v425_v26, %v329_v21 }
 0x100   : > { %873 = vtanh.f32 %v431_v25 }
 0x101   : > { %875 = vtanh.f32 %v426_v27  ;;  %v784_v29 = vpop.f32.mrb[2].mxu0 }
 0x102   : > { %v441_v30 = vadd.f32 %v784_v29, %v344_v28  ;;  %v435_v31 = vpop.f32.mrb[3].mxu0 }
 0x103   : > { %v436_v32 = vadd.f32 %v435_v31, %v339_v22 }
 0x104   : > { %877 = vtanh.f32 %v441_v30 }
 0x105   : > { %879 = vtanh.f32 %v436_v32 }
 0x10a   : > { %v874_v33 = vpop.eup %873 }
 0x10b   : > { %v876_v34 = vpop.eup %875 }
 0x10c   : > { %v814_v35 = vpack.c.bf16 %v874_v33, %v876_v34 }
 0x10e   : > { %v878_v36 = vpop.eup %877  ;;  %815 = vmatprep.subr.bf16.mxu1 %v814_v35 }
 0x10f   : > { %v880_v37 = vpop.eup %879  ;;  %817 = vmatpush3.bf16.msra.mxu1 %v814_v35 }
 0x110   : > { %v818_v38 = vpack.c.bf16 %v878_v36, %v880_v37 }
 0x112   : > { %819 = vmatprep.subr.bf16.mxu1 %v818_v38 }
 0x113   : > { %821 = vmatpush3.bf16.msra.mxu1 %v818_v38 }
 0x116   : > { %794 = vmatmul.mubr.msk.f32.vlgmr.msra.gmra.mrb[0].mxu1 %vm476_vm1, %v449_v39 }
 0x117   : > { %796 = vmatprep.mubr.msk.f32.mxu1 %vm476_vm1, %v450_v40 }
 0x11a   : > { %797 = vmatmul.mubr.msk.f32.gmra.mrb[2].mxu1 %vm476_vm1, %v451_v41 }
 0x1e9   : > { %v795_v46 = vpop.f32.mrb[0].mxu1 }
 0x1ea   : > { %v561_v47 = vadd.f32 %v795_v46, %v464_v44  ;;  %v555_v48 = vpop.f32.mrb[1].mxu1 }
 0x1eb   : > { %v556_v49 = vadd.f32 %v555_v48, %v459_v45 }
 0x1ec   : > { %881 = vtanh.f32 %v561_v47 }
 0x1ed   : > { %883 = vtanh.f32 %v556_v49  ;;  %v798_v51 = vpop.f32.mrb[2].mxu1 }
 0x1ee   : > { %v571_v53 = vadd.f32 %v798_v51, %v474_v50  ;;  %v565_v54 = vpop.f32.mrb[3].mxu1 }
 0x1ef   : > { %v566_v55 = vadd.f32 %v565_v54, %v469_v52 }
 0x1f0   : > { %885 = vtanh.f32 %v571_v53 }
 0x1f1   : > { %887 = vtanh.f32 %v566_v55 }
 0x1f6   : > { %v882_v56 = vpop.eup %881 }
 0x1f7   : > { %v884_v57 = vpop.eup %883 }
 0x1f8   : > { %v823_v58 = vpack.c.bf16 %v882_v56, %v884_v57 }
 0x1fa   : > { %v886_v59 = vpop.eup %885  ;;  %824 = vmatpush3.bf16.msra.mxu0 %v823_v58 }
 0x1fb   : > { %v888_v60 = vpop.eup %887  ;;  %825 = vmatprep.subr.bf16.mxu0 %v954_v42 }
 0x1fc   : > { %v826_v61 = vpack.c.bf16 %v886_v59, %v888_v60 }
 0x1fe   : > { %827 = vmatpush3.bf16.msra.mxu0 %v826_v61 }
 0x201   : > { %808 = vmatmul.mubr.msk.f32.vlgmr.msra.gmra.mrb[4].mxu0 %vm476_vm1, %v578_v62 }
 0x2d4   : > { %v658_v4 = vpop.f32.mrb[4].mxu0 }
 0x2d5   : > { %v659_v5 = vadd.f32 %v658_v4, %v588_v3  ;;  %v809_v6 = vpop.f32.mrb[5].mxu0 }
 0x2d7   : > { %662 = vst [vmem:[%s315_s16] sm:$0x1] %v659_v5 }
 0x2d8   : > { %902 = shalt.err (!%p899_p5)
}
 0x2d9   : > { %s903_s21 = scalar_lea.hbm %s1127_s20, 16  ;;  %s907_s10 = scalar_lea.hbm %s1178_s7, 32 }
 0x2da   : > { %p904_p7 = scmp.ne.s32.totalorder %s1127_s20, %s903_s21  ;;  %p908_p12 = scmp.lt.u32.totalorder %s1127_s20, %s1178_s7 }
 0x2db   : > { %p909_p13 = scmp.lt.u32.totalorder %s907_s10, %s903_s21  ;;  %p911_p1 = scmp.lt.u32.totalorder %s903_s21, %s1127_s20 }
 0x2dc   : > { %p905_p10 = pnand %p904_p7, %p1039_p6 }
 0x2dd   : > { %p910_p0 = por %p909_p13, %p908_p12 }
 0x2de   : > { %p906_p11 = pneg %p905_p10 }
 0x2df   : > { %p912_p2 = por %p911_p1, %p910_p0 }
 0x2e1   : > { %p913_p3 = pnand %p912_p2, %p906_p11 }
 0x2e3   : > { %916 = shalt.err (!%p913_p3)
}
 0x2e4   : > { %828 = dma.vmem_to_hbm [thread:$0]  (%p1039_p6), %s1129_s17, 16, %s1127_s20, %s664_s22  }
 0x2e5 PF: > { %s688_s16 = sand.u32 1, %s939_s26   ;;  %p831_p4 = pnand %p739_p9, %p1043_p8 }
 0x2e6   : > { %s689_s18 = scalar_lea.sflag [#allocation5], %s688_s16 }
 0x2e7   : > { %934 = dma.done.wait (!%p831_p4), %s689_s18, 16  }
 0x2e8   : > { %936 = vsyncadd (!%p831_p4), %s689_s18, 4294967280  ;;  %p19_p5 = scmp.ge.s32.totalorder %s1024_s8, 4   ;;  %s1181_s26 = smov %s943_s27 }
 0x2e9   : > { %s1182_s27 = smov %s947_s28  ;;  %s1183_s28 = smov %s1037_s11 }
 0x2ea   : > { %s1184_s29 = smov %s1024_s8  ;;  %21 = sbr.rel (!%p19_p5) target bundleno = 6 (0x6), region = 126 }
 0x2f1   :  { %693 = vsyncpa [#allocation5], 1 }
 0x2f2   :  { %695 = vsyncpa [#allocation5 + $0x1], 1 }

</bundles_post_ra>
